<compile_context>
chip_gen: v6e
topology: v6e:2x2x1
jax: 0.10.0
libtpu: 0.0.40
codegen_flags: <defaults>
</compile_context>

<pallas_src>
import functools

import jax
import jax.numpy as jnp
from jax.experimental import pallas as pl
from jax.experimental.pallas import tpu as pltpu


# ---------------------------------------------------------------------------
# helpers
# ---------------------------------------------------------------------------

def _round_up(x, m):
    return ((x + m - 1) // m) * m


def _pick_tile(n, preferred):
    """Largest multiple of 128 that is <= preferred and divides n (n % 128 == 0)."""
    t = min(preferred, n)
    t -= t % 128
    while n % t:
        t -= 128
    return t


# ---------------------------------------------------------------------------
# fused Pallas kernel
# ---------------------------------------------------------------------------

def _make_fused_gcn_kernel(tm, tk):
    def kernel(a_ref, x_ref, w_ref, b_ref, p_ref, wlin_ref, blin_ref,   # inputs
               out_ref,                                                 # output
               xw_ref, h_ref, acc_ref, pooled_ref):                     # scratch
        layer = pl.program_id(0)
        i = pl.program_id(1)
        k = pl.program_id(2)
        n_layers = pl.num_programs(0)
        n_i = pl.num_programs(1)
        n_k = pl.num_programs(2)

        first_of_layer = (i == 0) & (k == 0)

        # Hoisted projection: XW_L = H_{L-1} @ W_L computed once per layer and
        # kept resident in VMEM (avoids re-deriving it per A-tile).
        @pl.when(first_of_layer & (layer == 0))
        def _():
            pooled_ref[...] = jnp.zeros_like(pooled_ref)
            xw_ref[...] = jnp.dot(
                x_ref[...], w_ref[0],
                preferred_element_type=jnp.float32).astype(xw_ref.dtype)

        @pl.when(first_of_layer & (layer > 0))
        def _():
            xw_ref[...] = jnp.dot(
                h_ref[...], w_ref[0],
                preferred_element_type=jnp.float32).astype(xw_ref.dtype)

        # f32 accumulator over the neighbor (k) axis.
        @pl.when(k == 0)
        def _():
            acc_ref[...] = jnp.zeros_like(acc_ref)

        ks = pl.multiple_of(k * tk, tk)
        acc_ref[...] += jnp.dot(a_ref[...], xw_ref[pl.ds(ks, tk), :],
                                preferred_element_type=jnp.float32)

        last_k = k == n_k - 1
        last_layer = layer == n_layers - 1

        # Finalize a row tile: bias + ReLU, store back to the resident H
        # scratch (layers 0/1) or feed the fused mean-pool accumulator.
        @pl.when(last_k & (layer < n_layers - 1))
        def _():
            h_tile = jnp.maximum(acc_ref[...] + b_ref[0], 0.0)
            rs = pl.multiple_of(i * tm, tm)
            h_ref[pl.ds(rs, tm), :] = h_tile.astype(h_ref.dtype)

        @pl.when(last_k & last_layer)
        def _():
            h_tile = jnp.maximum(acc_ref[...] + b_ref[0], 0.0)
            pooled_ref[...] += jnp.dot(p_ref[...], h_tile.astype(p_ref.dtype),
                                       preferred_element_type=jnp.float32)

        # Epilogue: Linear head on the pooled embeddings, written once.
        # TODO(synk): F.dropout(p=0.5) is identity in eval mode -> omitted.
        @pl.when(last_k & last_layer & (i == n_i - 1))
        def _():
            out_ref[...] = (jnp.dot(pooled_ref[...].astype(wlin_ref.dtype),
                                    wlin_ref[...],
                                    preferred_element_type=jnp.float32)
                            + blin_ref[...])

    return kernel


# ---------------------------------------------------------------------------
# graph preprocessing + parameter init (plain JAX glue)
# ---------------------------------------------------------------------------

def build_norm_adj(edge_index, num_nodes):
    """A_hat = D^{-1/2} (A + I) D^{-1/2}, GCNConv-style symmetric normalization.

    Duplicate edges are accumulated (not deduped), matching PyG's GCNConv.
    """
    src, dst = edge_index[0], edge_index[1]
    a = jnp.zeros((num_nodes, num_nodes), jnp.float32).at[dst, src].add(1.0)
    a = a + jnp.eye(num_nodes, dtype=jnp.float32)  # self-loops
    deg = a.sum(axis=1)
    d_inv_sqrt = jnp.where(deg > 0, jax.lax.rsqrt(deg), 0.0)
    return a * d_inv_sqrt[:, None] * d_inv_sqrt[None, :]


def build_pool_matrix(batch, num_graphs, num_nodes):
    """[G, N] matrix whose rows average the nodes belonging to each graph."""
    onehot = (batch[None, :] == jnp.arange(num_graphs)[:, None]).astype(jnp.float32)
    counts = jnp.maximum(onehot.sum(axis=1, keepdims=True), 1.0)
    return onehot / counts


def init_params(key, node_features, hidden_channels, num_classes):
    ks = jax.random.split(key, 5)

    def glorot(k, fan_in, fan_out):
        lim = jnp.sqrt(6.0 / (fan_in + fan_out))
        return jax.random.uniform(k, (fan_in, fan_out), jnp.float32, -lim, lim)

    lin_bound = 1.0 / jnp.sqrt(jnp.float32(hidden_channels))
    return {
        "w1": glorot(ks[0], node_features, hidden_channels),
        "b1": jnp.zeros((1, hidden_channels), jnp.float32),
        "w2": glorot(ks[1], hidden_channels, hidden_channels),
        "b2": jnp.zeros((1, hidden_channels), jnp.float32),
        "w3": glorot(ks[2], hidden_channels, hidden_channels),
        "b3": jnp.zeros((1, hidden_channels), jnp.float32),
        # torch.nn.Linear weight is [out, in]; stored transposed here as [in, out].
        "w_lin": jax.random.uniform(ks[3], (hidden_channels, num_classes),
                                    jnp.float32, -lin_bound, lin_bound),
        "b_lin": jax.random.uniform(ks[4], (1, num_classes),
                                    jnp.float32, -lin_bound, lin_bound),
    }


# ---------------------------------------------------------------------------
# forward pass
# ---------------------------------------------------------------------------

@functools.partial(jax.jit, static_argnames=("num_graphs", "tm_pref", "tk_pref"))
def gcn_forward(params, x, edge_index, batch, *, num_graphs,
                tm_pref=512, tk_pref=512):
    n, f = x.shape
    hidden = params["w1"].shape[1]
    classes = params["w_lin"].shape[1]
    n_layers = 3

    a_hat = build_norm_adj(edge_index, n)
    pool_mat = build_pool_matrix(batch, num_graphs, n)

    # Lane-dense padding: features/hidden/classes -> multiples of 128, nodes
    # -> multiple of 128, graphs -> multiple of 8 (sublane).
    d = max(_round_up(f, 128), _round_up(hidden, 128))
    n_p = _round_up(n, 128)
    g_p = _round_up(num_graphs, 8)
    c_p = _round_up(classes, 128)

    tm = _pick_tile(n_p, tm_pref)
    tk = _pick_tile(n_p, tk_pref)

    def pad2(arr, shape, dtype):
        out = jnp.zeros(shape, dtype)
        return out.at[:arr.shape[0], :arr.shape[1]].set(arr.astype(dtype))

    a_p = pad2(a_hat, (n_p, n_p), jnp.bfloat16)
    x_p = pad2(x, (n_p, d), jnp.bfloat16)
    p_p = pad2(pool_mat, (g_p, n_p), jnp.bfloat16)
    w_stack = jnp.stack([pad2(params["w1"], (d, d), jnp.bfloat16),
                         pad2(params["w2"], (d, d), jnp.bfloat16),
                         pad2(params["w3"], (d, d), jnp.bfloat16)])
    b_stack = jnp.stack([pad2(params["b1"], (1, d), jnp.float32),
                         pad2(params["b2"], (1, d), jnp.float32),
                         pad2(params["b3"], (1, d), jnp.float32)])
    w_lin_p = pad2(params["w_lin"], (d, c_p), jnp.bfloat16)
    b_lin_p = pad2(params["b_lin"], (1, c_p), jnp.float32)

    grid = (n_layers, n_p // tm, n_p // tk)

    flops = (n_layers * 2 * n_p * d * d          # hoisted XW projections
             + n_layers * 2 * n_p * n_p * d      # A_hat @ XW
             + 2 * g_p * n_p * d                 # mean pool
             + 2 * g_p * d * c_p)                # linear head
    bytes_accessed = int(
        2 * (n_layers * n_p * n_p + n_p * d + n_layers * d * d
             + g_p * n_p + d * c_p)
        + 4 * (n_layers * d + c_p + g_p * c_p))

    # scoped-VMEM budget: scratches + double-buffered streamed inputs + margin,
    # clamped so it also fits v7x's smaller per-core VMEM.
    scratch_bytes = 2 * n_p * d * 2 + tm * d * 4 + g_p * d * 4
    stream_bytes = 2 * (tm * tk * 2 + n_p * d * 2 + d * d * 2
                        + g_p * tm * 2 + d * c_p * 2) + 4 * (3 * d + c_p + g_p * c_p)
    vmem_limit = int(min(max(1.5 * (scratch_bytes + stream_bytes), 16 << 20),
                         56 << 20))

    kernel = _make_fused_gcn_kernel(tm, tk)

    out = pl.pallas_call(
        kernel,
        out_shape=jax.ShapeDtypeStruct((g_p, c_p), jnp.float32),
        grid_spec=pltpu.PrefetchScalarGridSpec(
            num_scalar_prefetch=0,
            grid=grid,
            in_specs=[
                pl.BlockSpec((tm, tk), lambda L, i, k: (i, k)),      # A_hat tiles
                pl.BlockSpec((n_p, d), lambda L, i, k: (0, 0)),      # X (resident)
                pl.BlockSpec((1, d, d), lambda L, i, k: (L, 0, 0)),  # W_L
                pl.BlockSpec((1, 1, d), lambda L, i, k: (L, 0, 0)),  # b_L
                pl.BlockSpec((g_p, tm), lambda L, i, k: (0, i)),     # pool rows
                pl.BlockSpec((d, c_p), lambda L, i, k: (0, 0)),      # W_lin
                pl.BlockSpec((1, c_p), lambda L, i, k: (0, 0)),      # b_lin
            ],
            out_specs=pl.BlockSpec((g_p, c_p), lambda L, i, k: (0, 0)),
            scratch_shapes=[
                pltpu.VMEM((n_p, d), jnp.bfloat16),  # XW_L (hoisted projection)
                pltpu.VMEM((n_p, d), jnp.bfloat16),  # resident activations H_L
                pltpu.VMEM((tm, d), jnp.float32),    # row-tile accumulator
                pltpu.VMEM((g_p, d), jnp.float32),   # pooled accumulator
            ],
        ),
        compiler_params=pltpu.CompilerParams(
            dimension_semantics=("arbitrary", "arbitrary", "arbitrary"),
            vmem_limit_bytes=vmem_limit),
        cost_estimate=pl.CostEstimate(flops=int(flops), transcendentals=0,
                                      bytes_accessed=bytes_accessed),
    )(a_p, x_p, w_stack, b_stack, p_p, w_lin_p, b_lin_p)

    return out[:num_graphs, :classes]


def gcn_reference(params, x, edge_index, batch, num_graphs):
    """Pure-JAX f32 reference for numerical checking."""
    n = x.shape[0]
    a_hat = build_norm_adj(edge_index, n)
    pool_mat = build_pool_matrix(batch, num_graphs, n)
    h = jnp.maximum(a_hat @ (x @ params["w1"]) + params["b1"], 0.0)
    h = jnp.maximum(a_hat @ (h @ params["w2"]) + params["b2"], 0.0)
    h = jnp.maximum(a_hat @ (h @ params["w3"]) + params["b3"], 0.0)
    pooled = pool_mat @ h
    return pooled @ params["w_lin"] + params["b_lin"]


# ---------------------------------------------------------------------------
# demo
# ---------------------------------------------------------------------------

if __name__ == "__main__":
    key = jax.random.PRNGKey(0)

    NODE_FEATURES = 8
    HIDDEN = 32
    NUM_CLASSES = 4
    NUM_NODES = 16      # two graphs of 8 nodes each
    NUM_GRAPHS = 2

    k_param, k_x = jax.random.split(key)
    params = init_params(k_param, NODE_FEATURES, HIDDEN, NUM_CLASSES)
    x = jax.random.normal(k_x, (NUM_NODES, NODE_FEATURES), jnp.float32)

    # Deterministic edge_index [2, E]: a ring within each graph (undirected).
    edges = []
    for g in range(NUM_GRAPHS):
        n_g = NUM_NODES // NUM_GRAPHS
        base = g * n_g
        for i in range(n_g):
            u = base + i
            v = base + (i + 1) % n_g
            edges.append((u, v))
            edges.append((v, u))
    edge_index = jnp.array(list(zip(*edges)), dtype=jnp.int32)  # [2, E]

    batch = jnp.concatenate([
        jnp.zeros(NUM_NODES // 2, jnp.int32),
        jnp.ones(NUM_NODES // 2, jnp.int32),
    ])

    out = gcn_forward(params, x, edge_index, batch, num_graphs=NUM_GRAPHS)
    out = jax.block_until_ready(out)

    ref = gcn_reference(params, x, edge_index, batch, NUM_GRAPHS)
    assert out.shape == (NUM_GRAPHS, NUM_CLASSES)
    assert jnp.all(jnp.isfinite(out))
    assert jnp.allclose(out, ref, atol=5e-2, rtol=5e-2), (out, ref)
    print("KERNEL_OK")
</pallas_src>

<mosaic_0001>
module attributes {stable_mosaic.version = 11 : i64} {
  func.func private @main(%arg0: i32) attributes {dimension_semantics = [#tpu.dimension_semantics<core_parallel>], iteration_bounds = array<i64: 2>, tpu.core_type = #tpu.core_type<sc_scalar_subcore>, window_params = []} {
    return
  }
}

module attributes {stable_mosaic.version = 11 : i64} {
  func.func private @main(%arg0: i32) attributes {dimension_semantics = [#tpu.dimension_semantics<core_parallel>], iteration_bounds = array<i64: 2>, tpu.core_type = #tpu.core_type<sc_scalar_subcore>, window_params = []} {
    return
  }
}

module attributes {stable_mosaic.version = 11 : i64} {
  func.func @kernel(%arg0: i32, %arg1: i32, %arg2: i32, %arg3: memref<128x128xbf16, #tpu.memory_space<vmem>>, %arg4: memref<128x128xbf16, #tpu.memory_space<vmem>>, %arg5: memref<1x128x128xbf16, #tpu.memory_space<vmem>>, %arg6: memref<1x1x128xf32, #tpu.memory_space<vmem>>, %arg7: memref<8x128xbf16, #tpu.memory_space<vmem>>, %arg8: memref<128x128xbf16, #tpu.memory_space<vmem>>, %arg9: memref<1x128xf32, #tpu.memory_space<vmem>>, %arg10: memref<8x128xf32, #tpu.memory_space<vmem>>, %arg11: memref<128x128xbf16, #tpu.memory_space<vmem>>, %arg12: memref<128x128xbf16, #tpu.memory_space<vmem>>, %arg13: memref<128x128xf32, #tpu.memory_space<vmem>>, %arg14: memref<8x128xf32, #tpu.memory_space<vmem>>) attributes {dimension_semantics = [#tpu.dimension_semantics<arbitrary>, #tpu.dimension_semantics<arbitrary>, #tpu.dimension_semantics<arbitrary>], iteration_bounds = array<i64: 3, 1, 1>, scalar_prefetch = 0 : i64, scratch_operands = 4 : i64, tpu.core_type = #tpu.core_type<tc>, window_params = [{transform_indices = @transform_0, window_bounds = array<i64: 128, 128>}, {pipeline_mode = #tpu.pipeline_mode<synchronous>, transform_indices = @transform_1, window_bounds = array<i64: 128, 128>}, {transform_indices = @transform_2, window_bounds = array<i64: 1, 128, 128>}, {transform_indices = @transform_3, window_bounds = array<i64: 1, 1, 128>}, {transform_indices = @transform_4, window_bounds = array<i64: 8, 128>}, {pipeline_mode = #tpu.pipeline_mode<synchronous>, transform_indices = @transform_5, window_bounds = array<i64: 128, 128>}, {pipeline_mode = #tpu.pipeline_mode<synchronous>, transform_indices = @transform_6, window_bounds = array<i64: 1, 128>}, {pipeline_mode = #tpu.pipeline_mode<synchronous>, transform_indices = @transform_7, window_bounds = array<i64: 8, 128>}]} {
    %c0_i32 = arith.constant 0 : i32
    %0 = arith.cmpi eq, %arg1, %c0_i32 : i32
    %c0_i32_0 = arith.constant 0 : i32
    %1 = arith.cmpi eq, %arg2, %c0_i32_0 : i32
    %2 = arith.andi %0, %1 : i1
    %c0_i32_1 = arith.constant 0 : i32
    %3 = arith.cmpi eq, %arg0, %c0_i32_1 : i32
    %4 = arith.andi %2, %3 : i1
    %5 = arith.extui %4 : i1 to i32
    %c0_i32_2 = arith.constant 0 : i32
    %6 = arith.cmpi ne, %5, %c0_i32_2 : i32
    scf.if %6 {
      %cst_19 = arith.constant 0.000000e+00 : f32
      %37 = vector.broadcast %cst_19 : f32 to vector<8x128xf32>
      %c0_20 = arith.constant 0 : index
      %c0_21 = arith.constant 0 : index
      %38 = vector.load %arg14[%c0_20, %c0_21] : memref<8x128xf32, #tpu.memory_space<vmem>>, vector<8x128xf32>
      tpu.vector_store %arg14[%c0_20, %c0_21], %37 {strides = array<i32>} : memref<8x128xf32, #tpu.memory_space<vmem>>, vector<8x128xf32>,
      %c0_22 = arith.constant 0 : index
      %c0_23 = arith.constant 0 : index
      %39 = vector.load %arg4[%c0_22, %c0_23] : memref<128x128xbf16, #tpu.memory_space<vmem>>, vector<128x128xbf16>
      %c0_24 = arith.constant 0 : index
      %c0_25 = arith.constant 0 : index
      %c0_26 = arith.constant 0 : index
      %40 = vector.load %arg5[%c0_24, %c0_25, %c0_26] : memref<1x128x128xbf16, #tpu.memory_space<vmem>>, vector<1x128x128xbf16>
      %41 = vector.shape_cast %40 : vector<1x128x128xbf16> to vector<128x128xbf16>
      %cst_27 = arith.constant dense<0.000000e+00> : vector<128x128xf32>
      %42 = tpu.matmul %39, %41, %cst_27 {dimension_numbers = #tpu.dot_dimension_numbers<[1], [0], [0], [1], [0, 0, 1, 1], [], []>} : vector<128x128xbf16>, vector<128x128xbf16>, vector<128x128xf32> -> vector<128x128xf32>
      %43 = arith.truncf %42 : vector<128x128xf32> to vector<128x128xbf16>
      %c0_28 = arith.constant 0 : index
      %c0_29 = arith.constant 0 : index
      %44 = vector.load %arg11[%c0_28, %c0_29] : memref<128x128xbf16, #tpu.memory_space<vmem>>, vector<128x128xbf16>
      tpu.vector_store %arg11[%c0_28, %c0_29], %43 {strides = array<i32>} : memref<128x128xbf16, #tpu.memory_space<vmem>>, vector<128x128xbf16>,
    } else {
    }
    %c0_i32_3 = arith.constant 0 : i32
    %7 = arith.cmpi sgt, %arg0, %c0_i32_3 : i32
    %8 = arith.andi %2, %7 : i1
    %9 = arith.extui %8 : i1 to i32
    %c0_i32_4 = arith.constant 0 : i32
    %10 = arith.cmpi ne, %9, %c0_i32_4 : i32
    scf.if %10 {
      %c0_19 = arith.constant 0 : index
      %c0_20 = arith.constant 0 : index
      %37 = vector.load %arg12[%c0_19, %c0_20] : memref<128x128xbf16, #tpu.memory_space<vmem>>, vector<128x128xbf16>
      %c0_21 = arith.constant 0 : index
      %c0_22 = arith.constant 0 : index
      %c0_23 = arith.constant 0 : index
      %38 = vector.load %arg5[%c0_21, %c0_22, %c0_23] : memref<1x128x128xbf16, #tpu.memory_space<vmem>>, vector<1x128x128xbf16>
      %39 = vector.shape_cast %38 : vector<1x128x128xbf16> to vector<128x128xbf16>
      %cst_24 = arith.constant dense<0.000000e+00> : vector<128x128xf32>
      %40 = tpu.matmul %37, %39, %cst_24 {dimension_numbers = #tpu.dot_dimension_numbers<[1], [0], [0], [1], [0, 0, 1, 1], [], []>} : vector<128x128xbf16>, vector<128x128xbf16>, vector<128x128xf32> -> vector<128x128xf32>
      %41 = arith.truncf %40 : vector<128x128xf32> to vector<128x128xbf16>
      %c0_25 = arith.constant 0 : index
      %c0_26 = arith.constant 0 : index
      %42 = vector.load %arg11[%c0_25, %c0_26] : memref<128x128xbf16, #tpu.memory_space<vmem>>, vector<128x128xbf16>
      tpu.vector_store %arg11[%c0_25, %c0_26], %41 {strides = array<i32>} : memref<128x128xbf16, #tpu.memory_space<vmem>>, vector<128x128xbf16>,
    } else {
    }
    %c0_i32_5 = arith.constant 0 : i32
    %11 = arith.cmpi eq, %arg2, %c0_i32_5 : i32
    %12 = arith.extui %11 : i1 to i32
    %c0_i32_6 = arith.constant 0 : i32
    %13 = arith.cmpi ne, %12, %c0_i32_6 : i32
    scf.if %13 {
      %cst_19 = arith.constant 0.000000e+00 : f32
      %37 = vector.broadcast %cst_19 : f32 to vector<128x128xf32>
      %c0_20 = arith.constant 0 : index
      %c0_21 = arith.constant 0 : index
      %38 = vector.load %arg13[%c0_20, %c0_21] : memref<128x128xf32, #tpu.memory_space<vmem>>, vector<128x128xf32>
      tpu.vector_store %arg13[%c0_20, %c0_21], %37 {strides = array<i32>} : memref<128x128xf32, #tpu.memory_space<vmem>>, vector<128x128xf32>,
    } else {
    }
    %c128_i32 = arith.constant 128 : i32
    %14 = arith.muli %arg2, %c128_i32 : i32
    %15 = tpu.assume_multiple %14, 128 : i32
    %c0 = arith.constant 0 : index
    %c0_7 = arith.constant 0 : index
    %16 = vector.load %arg13[%c0, %c0_7] : memref<128x128xf32, #tpu.memory_space<vmem>>, vector<128x128xf32>
    %c0_8 = arith.constant 0 : index
    %c0_9 = arith.constant 0 : index
    %17 = vector.load %arg3[%c0_8, %c0_9] : memref<128x128xbf16, #tpu.memory_space<vmem>>, vector<128x128xbf16>
    %18 = arith.index_cast %15 : i32 to index
    %c0_10 = arith.constant 0 : index
    %19 = vector.load %arg11[%18, %c0_10] : memref<128x128xbf16, #tpu.memory_space<vmem>>, vector<128x128xbf16>
    %cst = arith.constant dense<0.000000e+00> : vector<128x128xf32>
    %20 = tpu.matmul %17, %19, %cst {dimension_numbers = #tpu.dot_dimension_numbers<[1], [0], [0], [1], [0, 0, 1, 1], [], []>} : vector<128x128xbf16>, vector<128x128xbf16>, vector<128x128xf32> -> vector<128x128xf32>
    %21 = arith.addf %16, %20 : vector<128x128xf32>
    %c0_11 = arith.constant 0 : index
    %c0_12 = arith.constant 0 : index
    %22 = vector.load %arg13[%c0_11, %c0_12] : memref<128x128xf32, #tpu.memory_space<vmem>>, vector<128x128xf32>
    tpu.vector_store %arg13[%c0_11, %c0_12], %21 {strides = array<i32>} : memref<128x128xf32, #tpu.memory_space<vmem>>, vector<128x128xf32>,
    %c0_i32_13 = arith.constant 0 : i32
    %23 = arith.cmpi eq, %arg2, %c0_i32_13 : i32
    %c2_i32 = arith.constant 2 : i32
    %24 = arith.cmpi eq, %arg0, %c2_i32 : i32
    %c2_i32_14 = arith.constant 2 : i32
    %25 = arith.cmpi slt, %arg0, %c2_i32_14 : i32
    %26 = arith.andi %23, %25 : i1
    %27 = arith.extui %26 : i1 to i32
    %c0_i32_15 = arith.constant 0 : i32
    %28 = arith.cmpi ne, %27, %c0_i32_15 : i32
    scf.if %28 {
      %c0_19 = arith.constant 0 : index
      %c0_20 = arith.constant 0 : index
      %37 = vector.load %arg13[%c0_19, %c0_20] : memref<128x128xf32, #tpu.memory_space<vmem>>, vector<128x128xf32>
      %c0_21 = arith.constant 0 : index
      %c0_22 = arith.constant 0 : index
      %c0_23 = arith.constant 0 : index
      %38 = vector.load %arg6[%c0_21, %c0_22, %c0_23] : memref<1x1x128xf32, #tpu.memory_space<vmem>>, vector<1x1x128xf32>
      %39 = vector.shape_cast %38 : vector<1x1x128xf32> to vector<1x128xf32>
      %40 = vector.broadcast %39 : vector<1x128xf32> to vector<128x128xf32>
      %41 = arith.addf %37, %40 : vector<128x128xf32>
      %cst_24 = arith.constant 0.000000e+00 : f32
      %42 = vector.broadcast %cst_24 : f32 to vector<128x128xf32>
      %43 = arith.maximumf %41, %42 : vector<128x128xf32>
      %c128_i32_25 = arith.constant 128 : i32
      %44 = arith.muli %arg1, %c128_i32_25 : i32
      %45 = tpu.assume_multiple %44, 128 : i32
      %46 = arith.truncf %43 : vector<128x128xf32> to vector<128x128xbf16>
      %47 = arith.index_cast %45 : i32 to index
      %c0_26 = arith.constant 0 : index
      %48 = vector.load %arg12[%47, %c0_26] : memref<128x128xbf16, #tpu.memory_space<vmem>>, vector<128x128xbf16>
      tpu.vector_store %arg12[%47, %c0_26], %46 {strides = array<i32>} : memref<128x128xbf16, #tpu.memory_space<vmem>>, vector<128x128xbf16>,
    } else {
    }
    %29 = arith.andi %23, %24 : i1
    %30 = arith.extui %29 : i1 to i32
    %c0_i32_16 = arith.constant 0 : i32
    %31 = arith.cmpi ne, %30, %c0_i32_16 : i32
    scf.if %31 {
      %c0_19 = arith.constant 0 : index
      %c0_20 = arith.constant 0 : index
      %37 = vector.load %arg13[%c0_19, %c0_20] : memref<128x128xf32, #tpu.memory_space<vmem>>, vector<128x128xf32>
      %c0_21 = arith.constant 0 : index
      %c0_22 = arith.constant 0 : index
      %c0_23 = arith.constant 0 : index
      %38 = vector.load %arg6[%c0_21, %c0_22, %c0_23] : memref<1x1x128xf32, #tpu.memory_space<vmem>>, vector<1x1x128xf32>
      %39 = vector.shape_cast %38 : vector<1x1x128xf32> to vector<1x128xf32>
      %40 = vector.broadcast %39 : vector<1x128xf32> to vector<128x128xf32>
      %41 = arith.addf %37, %40 : vector<128x128xf32>
      %cst_24 = arith.constant 0.000000e+00 : f32
      %42 = vector.broadcast %cst_24 : f32 to vector<128x128xf32>
      %43 = arith.maximumf %41, %42 : vector<128x128xf32>
      %c0_25 = arith.constant 0 : index
      %c0_26 = arith.constant 0 : index
      %44 = vector.load %arg14[%c0_25, %c0_26] : memref<8x128xf32, #tpu.memory_space<vmem>>, vector<8x128xf32>
      %c0_27 = arith.constant 0 : index
      %c0_28 = arith.constant 0 : index
      %45 = vector.load %arg7[%c0_27, %c0_28] : memref<8x128xbf16, #tpu.memory_space<vmem>>, vector<8x128xbf16>
      %46 = arith.truncf %43 : vector<128x128xf32> to vector<128x128xbf16>
      %cst_29 = arith.constant dense<0.000000e+00> : vector<8x128xf32>
      %47 = tpu.matmul %45, %46, %cst_29 {dimension_numbers = #tpu.dot_dimension_numbers<[1], [0], [0], [1], [0, 0, 1, 1], [], []>} : vector<8x128xbf16>, vector<128x128xbf16>, vector<8x128xf32> -> vector<8x128xf32>
      %48 = arith.addf %44, %47 : vector<8x128xf32>
      %c0_30 = arith.constant 0 : index
      %c0_31 = arith.constant 0 : index
      %49 = vector.load %arg14[%c0_30, %c0_31] : memref<8x128xf32, #tpu.memory_space<vmem>>, vector<8x128xf32>
      tpu.vector_store %arg14[%c0_30, %c0_31], %48 {strides = array<i32>} : memref<8x128xf32, #tpu.memory_space<vmem>>, vector<8x128xf32>,
    } else {
    }
    %32 = arith.andi %23, %24 : i1
    %c0_i32_17 = arith.constant 0 : i32
    %33 = arith.cmpi eq, %arg1, %c0_i32_17 : i32
    %34 = arith.andi %32, %33 : i1
    %35 = arith.extui %34 : i1 to i32
    %c0_i32_18 = arith.constant 0 : i32
    %36 = arith.cmpi ne, %35, %c0_i32_18 : i32
    scf.if %36 {
      %c0_19 = arith.constant 0 : index
      %c0_20 = arith.constant 0 : index
      %37 = vector.load %arg14[%c0_19, %c0_20] : memref<8x128xf32, #tpu.memory_space<vmem>>, vector<8x128xf32>
      %38 = arith.truncf %37 : vector<8x128xf32> to vector<8x128xbf16>
      %c0_21 = arith.constant 0 : index
      %c0_22 = arith.constant 0 : index
      %39 = vector.load %arg8[%c0_21, %c0_22] : memref<128x128xbf16, #tpu.memory_space<vmem>>, vector<128x128xbf16>
      %cst_23 = arith.constant dense<0.000000e+00> : vector<8x128xf32>
      %40 = tpu.matmul %38, %39, %cst_23 {dimension_numbers = #tpu.dot_dimension_numbers<[1], [0], [0], [1], [0, 0, 1, 1], [], []>} : vector<8x128xbf16>, vector<128x128xbf16>, vector<8x128xf32> -> vector<8x128xf32>
      %c0_24 = arith.constant 0 : index
      %c0_25 = arith.constant 0 : index
      %41 = vector.load %arg9[%c0_24, %c0_25] : memref<1x128xf32, #tpu.memory_space<vmem>>, vector<1x128xf32>
      %42 = vector.broadcast %41 : vector<1x128xf32> to vector<8x128xf32>
      %43 = arith.addf %40, %42 : vector<8x128xf32>
      %c0_26 = arith.constant 0 : index
      %c0_27 = arith.constant 0 : index
      %44 = vector.load %arg10[%c0_26, %c0_27] : memref<8x128xf32, #tpu.memory_space<vmem>>, vector<8x128xf32>
      tpu.vector_store %arg10[%c0_26, %c0_27], %43 {strides = array<i32>} : memref<8x128xf32, #tpu.memory_space<vmem>>, vector<8x128xf32>,
    } else {
    }
    return
  }
  func.func @transform_0(%arg0: i32, %arg1: i32, %arg2: i32) -> (i32, i32) {
    %c0_i32 = arith.constant 0 : i32
    return %arg1, %arg2 : i32, i32
  }
  func.func @transform_1(%arg0: i32, %arg1: i32, %arg2: i32) -> (i32, i32) {
    %c0_i32 = arith.constant 0 : i32
    %c0_i32_0 = arith.constant 0 : i32
    %c0_i32_1 = arith.constant 0 : i32
    return %c0_i32, %c0_i32_0 : i32, i32
  }
  func.func @transform_2(%arg0: i32, %arg1: i32, %arg2: i32) -> (i32, i32, i32) {
    %c0_i32 = arith.constant 0 : i32
    %c0_i32_0 = arith.constant 0 : i32
    %c0_i32_1 = arith.constant 0 : i32
    return %arg0, %c0_i32, %c0_i32_0 : i32, i32, i32
  }
  func.func @transform_3(%arg0: i32, %arg1: i32, %arg2: i32) -> (i32, i32, i32) {
    %c0_i32 = arith.constant 0 : i32
    %c0_i32_0 = arith.constant 0 : i32
    %c0_i32_1 = arith.constant 0 : i32
    return %arg0, %c0_i32, %c0_i32_0 : i32, i32, i32
  }
  func.func @transform_4(%arg0: i32, %arg1: i32, %arg2: i32) -> (i32, i32) {
    %c0_i32 = arith.constant 0 : i32
    %c0_i32_0 = arith.constant 0 : i32
    return %c0_i32, %arg1 : i32, i32
  }
  func.func @transform_5(%arg0: i32, %arg1: i32, %arg2: i32) -> (i32, i32) {
    %c0_i32 = arith.constant 0 : i32
    %c0_i32_0 = arith.constant 0 : i32
    %c0_i32_1 = arith.constant 0 : i32
    return %c0_i32, %c0_i32_0 : i32, i32
  }
  func.func @transform_6(%arg0: i32, %arg1: i32, %arg2: i32) -> (i32, i32) {
    %c0_i32 = arith.constant 0 : i32
    %c0_i32_0 = arith.constant 0 : i32
    %c0_i32_1 = arith.constant 0 : i32
    return %c0_i32, %c0_i32_0 : i32, i32
  }
  func.func @transform_7(%arg0: i32, %arg1: i32, %arg2: i32) -> (i32, i32) {
    %c0_i32 = arith.constant 0 : i32
    %c0_i32_0 = arith.constant 0 : i32
    %c0_i32_1 = arith.constant 0 : i32
    return %c0_i32, %c0_i32_0 : i32, i32
  }
}

</mosaic_0001>

<bundles_post_ra>
// kernel: gcn_forward.1
= control target key start
LH: loop header
LB: loop body
LE: loop exit
PB: predicated region body
PF: predicated region fallthrough
CT: control target
= control target key end

     0   :  { %s2453_s24 = smov 0   ;;  %s2455_s25 = smov 0   ;;  %s2631_s0 = inlined_call_operand.vmem [shape: bf16[128,128], index: 0, kind: input, shape index: {}]   ;;  %s2632_s1 = inlined_call_operand.vmem [shape: bf16[128,128], index: 1, kind: input, shape index: {}]   ;;  %s2633_s2 = inlined_call_operand.vmem [shape: bf16[3,128,128], index: 2, kind: input, shape index: {}]   ;;  %s2634_s3 = inlined_call_operand.vmem [shape: f32[3,1,128], index: 3, kind: input, shape index: {}]   ;;  %s2635_s4 = inlined_call_operand.vmem [shape: bf16[8,128], index: 4, kind: input, shape index: {}]   ;;  %s2636_s5 = inlined_call_operand.vmem [shape: bf16[128,128], index: 5, kind: input, shape index: {}]   ;;  %s2637_s6 = inlined_call_operand.vmem [shape: f32[1,128], index: 6, kind: input, shape index: {}]   ;;  %s2638_s7 = inlined_call_operand.vmem [shape: f32[8,128], index: 7, kind: output, shape index: {}]  }
   0x1   :  { %s2457_s26 = smov 0  }
   0x2 LB: > { %s36_s27 = sadd.s32 1, %s2402_s25  ;;  %p1736_p0 = scmp.ge.s32.totalorder %s2406_s26, 1  ;;  %s2406_s26 = sphi %s2457_s26, %s17_s26   ;;  %s2402_s25 = sphi %s2455_s25, %s2640_s25   ;;  %s2398_s24 = sphi %s2453_s24, %s2639_s24  }
   0x3   : > { %p38_p1 = scmp.ge.s32.totalorder %s36_s27, 3  ;;  %p284_p2 = scmp.lt.s32.totalorder %s2406_s26, 4 }
   0x5   : > { %s2642_s27 = smov (%p38_p1, %s36_s27), 0  ;;  %p285_p3 = pnand %p1736_p0, %p284_p2 }
   0x6   : > { %p335_p4 = scmp.lt.s32.totalorder (!%p285_p3), %s2398_s24, 2  ;;  %p352_p5 = scmp.eq.s32.totalorder (!%p285_p3), %s2398_s24, 0 }
   0x7   : > { %288 = sbr.rel (%p285_p3) target bundleno = 1235 (0x4d3), region = 48 }
   0xc   : > { %s336_s28 = scalar_select %p335_p4, %s2398_s24, 2  ;;  %v2408_v1 = vmov (%p352_p5), 0.0   ;;  %v2336_v5 = vld [vmem:[%s2632_s1] sm:$0xff] (%p352_p5)   ;;  %v2338_v11 = vld [vmem:[%s2632_s1 + $0x8] sm:$0xff] (%p352_p5)   ;;  %v2340_v13 = vld [vmem:[%s2632_s1 + $0x10] sm:$0xff] (%p352_p5)  }
   0xd   : > { %356 = sbr.rel (!%p352_p5) target bundleno = 259 (0x103), region = 52  ;;  %357 = vst [vmem:[#allocation5] sm:$0xff] (%p352_p5), %v2408_v1  ;;  %v2337_v6 = vld [vmem:[%s2632_s1 + $0x20] sm:$0xff] (%p352_p5)   ;;  %2130 = vmatprep.mubr.bf16.mxu0 (%p352_p5), %v2336_v5  ;;  %v2339_v12 = vld [vmem:[%s2632_s1 + $0x28] sm:$0xff] (%p352_p5)   ;;  %v2341_v14 = vld [vmem:[%s2632_s1 + $0x30] sm:$0xff] (%p352_p5)  }
   0xe   : > { %s1853_s29 = sshll.u32 %s336_s28, 6  ;;  %s2481_s9 = scalar_lea.vmem %s2634_s3, %s336_s28  ;;  %2138 = vmatprep.mubr.bf16.mxu1 (%p352_p5), %v2337_v6  ;;  %v2342_v15 = vld [vmem:[%s2632_s1 + $0x18] sm:$0xff] (%p352_p5)  }
   0xf   : > { %s2486_s12 = scalar_lea.vmem %s2633_s2, %s1853_s29  ;;  %v2343_v16 = vld [vmem:[%s2632_s1 + $0x38] sm:$0xff] (%p352_p5)  }
  0x10   : > { %v2328_v0 = vld [vmem:[%s2486_s12 + $0x38] sm:$0xff] (%p352_p5)   ;;  %v2329_v2 = vld [vmem:[%s2486_s12 + $0x30] sm:$0xff] (%p352_p5)   ;;  %v2330_v3 = vld [vmem:[%s2486_s12 + $0x28] sm:$0xff] (%p352_p5)  }
  0x11   : > { %2114 = vmatprep.subr.bf16.mxu0 (%p352_p5), %v2328_v0  ;;  %2250 = vmatprep.subr.bf16.mxu1 (%p352_p5), %v2328_v0  ;;  %v2331_v4 = vld [vmem:[%s2486_s12 + $0x20] sm:$0xff] (%p352_p5)   ;;  %v2332_v7 = vld [vmem:[%s2486_s12 + $0x18] sm:$0xff] (%p352_p5)   ;;  %v2333_v8 = vld [vmem:[%s2486_s12 + $0x10] sm:$0xff] (%p352_p5)  }
  0x12   : > { %2115 = vmatpush3.bf16.msra.mxu0 %v2328_v0  ;;  %2258 = vmatpush3.bf16.msra.mxu1 %v2328_v0  ;;  %v2334_v9 = vld [vmem:[%s2486_s12 + $0x8] sm:$0xff]   ;;  %v2335_v10 = vld [vmem:[%s2486_s12] sm:$0xff]  }
  0x13   : > { %2116 = vmatprep.subr.bf16.mxu0 %v2329_v2  ;;  %2251 = vmatprep.subr.bf16.mxu1 %v2329_v2 }
  0x16   : > { %2117 = vmatpush3.bf16.msra.mxu0 %v2329_v2  ;;  %2259 = vmatpush3.bf16.msra.mxu1 %v2329_v2 }
  0x17   : > { %2118 = vmatprep.subr.bf16.mxu0 %v2330_v3  ;;  %2252 = vmatprep.subr.bf16.mxu1 %v2330_v3 }
  0x1a   : > { %2119 = vmatpush3.bf16.msra.mxu0 %v2330_v3  ;;  %2260 = vmatpush3.bf16.msra.mxu1 %v2330_v3 }
  0x1b   : > { %2120 = vmatprep.subr.bf16.mxu0 %v2331_v4  ;;  %2253 = vmatprep.subr.bf16.mxu1 %v2331_v4 }
  0x1e   : > { %2121 = vmatpush3.bf16.msra.mxu0 %v2331_v4  ;;  %2261 = vmatpush3.bf16.msra.mxu1 %v2331_v4 }
  0x1f   : > { %2122 = vmatprep.subr.bf16.mxu0 %v2332_v7  ;;  %2254 = vmatprep.subr.bf16.mxu1 %v2332_v7 }
  0x22   : > { %2123 = vmatpush3.bf16.msra.mxu0 %v2332_v7  ;;  %2262 = vmatpush3.bf16.msra.mxu1 %v2332_v7 }
  0x23   : > { %2124 = vmatprep.subr.bf16.mxu0 %v2333_v8  ;;  %2255 = vmatprep.subr.bf16.mxu1 %v2333_v8 }
  0x26   : > { %2125 = vmatpush3.bf16.msra.mxu0 %v2333_v8  ;;  %2263 = vmatpush3.bf16.msra.mxu1 %v2333_v8 }
  0x27   : > { %2126 = vmatprep.subr.bf16.mxu0 %v2334_v9  ;;  %2256 = vmatprep.subr.bf16.mxu1 %v2334_v9 }
  0x2a   : > { %2127 = vmatpush3.bf16.msra.mxu0 %v2334_v9  ;;  %2264 = vmatpush3.bf16.msra.mxu1 %v2334_v9 }
  0x2b   : > { %2128 = vmatprep.subr.bf16.mxu0 %v2335_v10  ;;  %2257 = vmatprep.subr.bf16.mxu1 %v2335_v10 }
  0x2e   : > { %2129 = vmatpush3.bf16.msra.mxu0 %v2335_v10  ;;  %2265 = vmatpush3.bf16.msra.mxu1 %v2335_v10 }
  0x31   : > { %2131 = vmatmul.mubr.bf16.vlgmr.msra.gmra.mxu0 %v2338_v11  ;;  %2139 = vmatmul.mubr.bf16.vlgmr.msra.gmra.mxu1 %v2339_v12 }
  0x32   : > { %2134 = vmatprep.mubr.bf16.mxu0 %v2340_v13  ;;  %2142 = vmatprep.mubr.bf16.mxu1 %v2341_v14 }
  0x39   : > { %2135 = vmatmul.mubr.bf16.gmra.mxu0 %v2342_v15  ;;  %2143 = vmatmul.mubr.bf16.gmra.mxu1 %v2343_v16 }
  0xf1   : > { %v2132_v17 = vpop.f32.mrf.mxu0  ;;  %v2140_v18 = vpop.f32.mrf.mxu1 }
  0xf3   : > { %v520_v19 = vpop.f32.mrf.mxu0  ;;  %v552_v20 = vpop.f32.mrf.mxu1 }
  0xf5   : > { %v2133_v21 = vpop.f32.mrf.mxu0  ;;  %v2141_v22 = vpop.f32.mrf.mxu1 }
  0xf6   : > { %v1915_v23 = vpack.c.bf16 %v2133_v21, %v2132_v17  ;;  %v1935_v24 = vpack.c.bf16 %v2141_v22, %v2140_v18 }
  0xf7   : > { %v523_v25 = vpop.f32.mrf.mxu0  ;;  %v555_v26 = vpop.f32.mrf.mxu1 }
  0xf8   : > { %2027 = vst [vmem:[#allocation2 + $0x8] sm:$0xff] %v1915_v23   ;;  %2031 = vst [vmem:[#allocation2 + $0x28] sm:$0xff] %v1935_v24   ;;  %v1910_v27 = vpack.c.bf16 %v523_v25, %v520_v19  ;;  %v1930_v28 = vpack.c.bf16 %v555_v26, %v552_v20 }
  0xf9   : > { %v2136_v29 = vpop.f32.mrf.mxu0  ;;  %v2144_v30 = vpop.f32.mrf.mxu1 }
  0xfa   : > { %1911 = vst [vmem:[#allocation2] sm:$0xff] %v1910_v27   ;;  %2030 = vst [vmem:[#allocation2 + $0x20] sm:$0xff] %v1930_v28  }
  0xfb   : > { %v536_v31 = vpop.f32.mrf.mxu0  ;;  %v568_v32 = vpop.f32.mrf.mxu1 }
  0xfd   : > { %v2137_v33 = vpop.f32.mrf.mxu0  ;;  %v2145_v34 = vpop.f32.mrf.mxu1 }
  0xfe   : > { %v1925_v35 = vpack.c.bf16 %v2137_v33, %v2136_v29  ;;  %v1945_v36 = vpack.c.bf16 %v2145_v34, %v2144_v30 }
  0xff   : > { %v539_v37 = vpop.f32.mrf.mxu0  ;;  %v571_v38 = vpop.f32.mrf.mxu1 }
 0x100   : > { %2029 = vst [vmem:[#allocation2 + $0x18] sm:$0xff] %v1925_v35   ;;  %2033 = vst [vmem:[#allocation2 + $0x38] sm:$0xff] %v1945_v36   ;;  %v1920_v39 = vpack.c.bf16 %v539_v37, %v536_v31  ;;  %v1940_v40 = vpack.c.bf16 %v571_v38, %v568_v32 }
 0x102   : > { %2028 = vst [vmem:[#allocation2 + $0x10] sm:$0xff] %v1920_v39   ;;  %2032 = vst [vmem:[#allocation2 + $0x30] sm:$0xff] %v1940_v40  }
 0x103 PF: > { %p663_p6 = scmp.gt.s32.totalorder %s2398_s24, 0 }
 0x104   : > { %v2344_v41 = vld [vmem:[%s2486_s12 + $0x38] sm:$0xff] (%p663_p6)   ;;  %v2345_v42 = vld [vmem:[%s2486_s12 + $0x30] sm:$0xff] (%p663_p6)   ;;  %v2346_v43 = vld [vmem:[%s2486_s12 + $0x28] sm:$0xff] (%p663_p6)  }
 0x105   : > { %667 = sbr.rel (!%p663_p6) target bundleno = 503 (0x1f7), region = 56  ;;  %2146 = vmatprep.subr.bf16.mxu0 (%p663_p6), %v2344_v41  ;;  %2266 = vmatprep.subr.bf16.mxu1 (%p663_p6), %v2344_v41  ;;  %v2347_v44 = vld [vmem:[%s2486_s12 + $0x20] sm:$0xff] (%p663_p6)   ;;  %v2348_v47 = vld [vmem:[%s2486_s12 + $0x18] sm:$0xff] (%p663_p6)   ;;  %v2349_v48 = vld [vmem:[%s2486_s12 + $0x10] sm:$0xff] (%p663_p6)  }
 0x106   : > { %2147 = vmatpush3.bf16.msra.mxu0 (%p663_p6), %v2344_v41  ;;  %2274 = vmatpush3.bf16.msra.mxu1 (%p663_p6), %v2344_v41  ;;  %v2352_v45 = vld [vmem:[#allocation3] sm:$0xff] (%p663_p6)   ;;  %v2350_v49 = vld [vmem:[%s2486_s12 + $0x8] sm:$0xff] (%p663_p6)   ;;  %v2356_v53 = vld [vmem:[#allocation3 + $0x10] sm:$0xff] (%p663_p6)  }
 0x107   : > { %2148 = vmatprep.subr.bf16.mxu0 (%p663_p6), %v2345_v42  ;;  %2267 = vmatprep.subr.bf16.mxu1 (%p663_p6), %v2345_v42  ;;  %v2353_v46 = vld [vmem:[#allocation3 + $0x20] sm:$0xff] (%p663_p6)   ;;  %v2354_v51 = vld [vmem:[#allocation3 + $0x8] sm:$0xff] (%p663_p6)   ;;  %v2357_v54 = vld [vmem:[#allocation3 + $0x30] sm:$0xff] (%p663_p6)  }
 0x108   : > { %2162 = vmatprep.mubr.bf16.mxu0 (%p663_p6), %v2352_v45  ;;  %2170 = vmatprep.mubr.bf16.mxu1 (%p663_p6), %v2353_v46  ;;  %v2351_v50 = vld [vmem:[%s2486_s12] sm:$0xff] (%p663_p6)   ;;  %v2355_v52 = vld [vmem:[#allocation3 + $0x28] sm:$0xff] (%p663_p6)   ;;  %v2358_v55 = vld [vmem:[#allocation3 + $0x18] sm:$0xff] (%p663_p6)  }
 0x109   : > { %v2359_v56 = vld [vmem:[#allocation3 + $0x38] sm:$0xff] (%p663_p6)  }
 0x10a   : > { %2149 = vmatpush3.bf16.msra.mxu0 %v2345_v42  ;;  %2275 = vmatpush3.bf16.msra.mxu1 %v2345_v42 }
 0x10b   : > { %2150 = vmatprep.subr.bf16.mxu0 %v2346_v43  ;;  %2268 = vmatprep.subr.bf16.mxu1 %v2346_v43 }
 0x10e   : > { %2151 = vmatpush3.bf16.msra.mxu0 %v2346_v43  ;;  %2276 = vmatpush3.bf16.msra.mxu1 %v2346_v43 }
 0x10f   : > { %2152 = vmatprep.subr.bf16.mxu0 %v2347_v44  ;;  %2269 = vmatprep.subr.bf16.mxu1 %v2347_v44 }
 0x112   : > { %2153 = vmatpush3.bf16.msra.mxu0 %v2347_v44  ;;  %2277 = vmatpush3.bf16.msra.mxu1 %v2347_v44 }
 0x113   : > { %2154 = vmatprep.subr.bf16.mxu0 %v2348_v47  ;;  %2270 = vmatprep.subr.bf16.mxu1 %v2348_v47 }
 0x116   : > { %2155 = vmatpush3.bf16.msra.mxu0 %v2348_v47  ;;  %2278 = vmatpush3.bf16.msra.mxu1 %v2348_v47 }
 0x117   : > { %2156 = vmatprep.subr.bf16.mxu0 %v2349_v48  ;;  %2271 = vmatprep.subr.bf16.mxu1 %v2349_v48 }
 0x11a   : > { %2157 = vmatpush3.bf16.msra.mxu0 %v2349_v48  ;;  %2279 = vmatpush3.bf16.msra.mxu1 %v2349_v48 }
 0x11b   : > { %2158 = vmatprep.subr.bf16.mxu0 %v2350_v49  ;;  %2272 = vmatprep.subr.bf16.mxu1 %v2350_v49 }
 0x11e   : > { %2159 = vmatpush3.bf16.msra.mxu0 %v2350_v49  ;;  %2280 = vmatpush3.bf16.msra.mxu1 %v2350_v49 }
 0x11f   : > { %2160 = vmatprep.subr.bf16.mxu0 %v2351_v50  ;;  %2273 = vmatprep.subr.bf16.mxu1 %v2351_v50 }
 0x122   : > { %2161 = vmatpush3.bf16.msra.mxu0 %v2351_v50  ;;  %2281 = vmatpush3.bf16.msra.mxu1 %v2351_v50 }
 0x125   : > { %2163 = vmatmul.mubr.bf16.vlgmr.msra.gmra.mxu0 %v2354_v51  ;;  %2171 = vmatmul.mubr.bf16.vlgmr.msra.gmra.mxu1 %v2355_v52 }
 0x126   : > { %2166 = vmatprep.mubr.bf16.mxu0 %v2356_v53  ;;  %2174 = vmatprep.mubr.bf16.mxu1 %v2357_v54 }
 0x12d   : > { %2167 = vmatmul.mubr.bf16.gmra.mxu0 %v2358_v55  ;;  %2175 = vmatmul.mubr.bf16.gmra.mxu1 %v2359_v56 }
 0x1e5   : > { %v2164_v57 = vpop.f32.mrf.mxu0  ;;  %v2172_v58 = vpop.f32.mrf.mxu1 }
 0x1e7   : > { %v830_v59 = vpop.f32.mrf.mxu0  ;;  %v862_v60 = vpop.f32.mrf.mxu1 }
 0x1e9   : > { %v2165_v61 = vpop.f32.mrf.mxu0  ;;  %v2173_v62 = vpop.f32.mrf.mxu1 }
 0x1ea   : > { %v1955_v63 = vpack.c.bf16 %v2165_v61, %v2164_v57  ;;  %v1975_v0 = vpack.c.bf16 %v2173_v62, %v2172_v58 }
 0x1eb   : > { %v833_v1 = vpop.f32.mrf.mxu0  ;;  %v865_v2 = vpop.f32.mrf.mxu1 }
 0x1ec   : > { %2034 = vst [vmem:[#allocation2 + $0x8] sm:$0xff] %v1955_v63   ;;  %2038 = vst [vmem:[#allocation2 + $0x28] sm:$0xff] %v1975_v0   ;;  %v1950_v3 = vpack.c.bf16 %v833_v1, %v830_v59  ;;  %v1970_v4 = vpack.c.bf16 %v865_v2, %v862_v60 }
 0x1ed   : > { %v2168_v5 = vpop.f32.mrf.mxu0  ;;  %v2176_v6 = vpop.f32.mrf.mxu1 }
 0x1ee   : > { %1951 = vst [vmem:[#allocation2] sm:$0xff] %v1950_v3   ;;  %2037 = vst [vmem:[#allocation2 + $0x20] sm:$0xff] %v1970_v4  }
 0x1ef   : > { %v846_v7 = vpop.f32.mrf.mxu0  ;;  %v878_v8 = vpop.f32.mrf.mxu1 }
 0x1f1   : > { %v2169_v9 = vpop.f32.mrf.mxu0  ;;  %v2177_v10 = vpop.f32.mrf.mxu1 }
 0x1f2   : > { %v1965_v11 = vpack.c.bf16 %v2169_v9, %v2168_v5  ;;  %v1985_v12 = vpack.c.bf16 %v2177_v10, %v2176_v6 }
 0x1f3   : > { %v849_v13 = vpop.f32.mrf.mxu0  ;;  %v881_v14 = vpop.f32.mrf.mxu1 }
 0x1f4   : > { %2036 = vst [vmem:[#allocation2 + $0x18] sm:$0xff] %v1965_v11   ;;  %2040 = vst [vmem:[#allocation2 + $0x38] sm:$0xff] %v1985_v12   ;;  %v1960_v15 = vpack.c.bf16 %v849_v13, %v846_v7  ;;  %v1980_v16 = vpack.c.bf16 %v881_v14, %v878_v8 }
 0x1f6   : > { %2035 = vst [vmem:[#allocation2 + $0x10] sm:$0xff] %v1960_v15   ;;  %2039 = vst [vmem:[#allocation2 + $0x30] sm:$0xff] %v1980_v16  }
 0x1f7 PF: > { %v2362_v19 = vld [vmem:[#allocation2 + $0x28] sm:$0xff]   ;;  %v2363_v20 = vld [vmem:[#allocation2 + $0x20] sm:$0xff]   ;;  %v2372_v29 = vld [vmem:[%s2631_s0 + $0x10] sm:$0xff]   ;;  %p1270_p7 = scmp.eq.s32.totalorder %s2398_s24, 2 }
 0x1f8   : > { %v2368_v21 = vld [vmem:[%s2631_s0] sm:$0xff]   ;;  %v2366_v25 = vld [vmem:[#allocation2 + $0x8] sm:$0xff]   ;;  %v2373_v30 = vld [vmem:[%s2631_s0 + $0x30] sm:$0xff]  }
 0x1f9   : > { %v2369_v22 = vld [vmem:[%s2631_s0 + $0x20] sm:$0xff]   ;;  %2194 = vmatprep.mubr.bf16.mxu0 %v2368_v21  ;;  %v2370_v27 = vld [vmem:[%s2631_s0 + $0x8] sm:$0xff]   ;;  %v2374_v31 = vld [vmem:[%s2631_s0 + $0x18] sm:$0xff]  }
 0x1fa   : > { %2202 = vmatprep.mubr.bf16.mxu1 %v2369_v22  ;;  %v2367_v26 = vld [vmem:[#allocation2] sm:$0xff]   ;;  %v2371_v28 = vld [vmem:[%s2631_s0 + $0x28] sm:$0xff]   ;;  %v2375_v32 = vld [vmem:[%s2631_s0 + $0x38] sm:$0xff]  }
 0x1fb   : > { %v2360_v17 = vld [vmem:[#allocation2 + $0x38] sm:$0xff]   ;;  %v1822_v51 = vld [vmem:[%s2481_s9] ss:$0 sm:$0xff] (%p335_p4) }
 0x1fc   : > { %2178 = vmatprep.subr.bf16.mxu0 %v2360_v17  ;;  %2282 = vmatprep.subr.bf16.mxu1 %v2360_v17  ;;  %v2364_v23 = vld [vmem:[#allocation2 + $0x18] sm:$0xff]  }
 0x1fd   : > { %v2361_v18 = vld [vmem:[#allocation2 + $0x30] sm:$0xff]   ;;  %2179 = vmatpush3.bf16.msra.mxu0 %v2360_v17  ;;  %2290 = vmatpush3.bf16.msra.mxu1 %v2360_v17 }
 0x1fe   : > { %2180 = vmatprep.subr.bf16.mxu0 %v2361_v18  ;;  %2283 = vmatprep.subr.bf16.mxu1 %v2361_v18  ;;  %v2365_v24 = vld [vmem:[#allocation2 + $0x10] sm:$0xff]  }
 0x201   : > { %2181 = vmatpush3.bf16.msra.mxu0 %v2361_v18  ;;  %2291 = vmatpush3.bf16.msra.mxu1 %v2361_v18 }
 0x202   : > { %2182 = vmatprep.subr.bf16.mxu0 %v2362_v19  ;;  %2284 = vmatprep.subr.bf16.mxu1 %v2362_v19 }
 0x205   : > { %2183 = vmatpush3.bf16.msra.mxu0 %v2362_v19  ;;  %2292 = vmatpush3.bf16.msra.mxu1 %v2362_v19 }
 0x206   : > { %2184 = vmatprep.subr.bf16.mxu0 %v2363_v20  ;;  %2285 = vmatprep.subr.bf16.mxu1 %v2363_v20 }
 0x209   : > { %2185 = vmatpush3.bf16.msra.mxu0 %v2363_v20  ;;  %2293 = vmatpush3.bf16.msra.mxu1 %v2363_v20 }
 0x20a   : > { %2186 = vmatprep.subr.bf16.mxu0 %v2364_v23  ;;  %2286 = vmatprep.subr.bf16.mxu1 %v2364_v23 }
 0x20d   : > { %2187 = vmatpush3.bf16.msra.mxu0 %v2364_v23  ;;  %2294 = vmatpush3.bf16.msra.mxu1 %v2364_v23 }
 0x20e   : > { %2188 = vmatprep.subr.bf16.mxu0 %v2365_v24  ;;  %2287 = vmatprep.subr.bf16.mxu1 %v2365_v24 }
 0x211   : > { %2189 = vmatpush3.bf16.msra.mxu0 %v2365_v24  ;;  %2295 = vmatpush3.bf16.msra.mxu1 %v2365_v24 }
 0x212   : > { %2190 = vmatprep.subr.bf16.mxu0 %v2366_v25  ;;  %2288 = vmatprep.subr.bf16.mxu1 %v2366_v25 }
 0x215   : > { %2191 = vmatpush3.bf16.msra.mxu0 %v2366_v25  ;;  %2296 = vmatpush3.bf16.msra.mxu1 %v2366_v25 }
 0x216   : > { %2192 = vmatprep.subr.bf16.mxu0 %v2367_v26  ;;  %2289 = vmatprep.subr.bf16.mxu1 %v2367_v26 }
 0x219   : > { %2193 = vmatpush3.bf16.msra.mxu0 %v2367_v26  ;;  %2297 = vmatpush3.bf16.msra.mxu1 %v2367_v26 }
 0x21c   : > { %2195 = vmatmul.mubr.bf16.vlgmr.msra.gmra.mxu0 %v2370_v27  ;;  %2203 = vmatmul.mubr.bf16.vlgmr.msra.gmra.mxu1 %v2371_v28 }
 0x21d   : > { %2198 = vmatprep.mubr.bf16.mxu0 %v2372_v29  ;;  %2206 = vmatprep.mubr.bf16.mxu1 %v2373_v30 }
 0x224   : > { %2199 = vmatmul.mubr.bf16.gmra.mxu0 %v2374_v31  ;;  %2207 = vmatmul.mubr.bf16.gmra.mxu1 %v2375_v32 }
 0x2dc   : > { %v2196_v33 = vpop.f32.mrf.mxu0  ;;  %v2204_v34 = vpop.f32.mrf.mxu1 }
 0x2dd   : > { %1256 = vst [vmem:[#allocation4 + $0x58] sm:$0xff] %v2196_v33  ;;  %1264 = vst [vmem:[#allocation4 + $0x10] sm:$0xff] %v2204_v34 }
 0x2de   : > { %v1175_v35 = vpop.f32.mrf.mxu0  ;;  %v1207_v36 = vpop.f32.mrf.mxu1 }
 0x2df   : > { %1254 = vst [vmem:[#allocation4 + $0x30] sm:$0xff] %v1175_v35  ;;  %1262 = vst [vmem:[#allocation4 + $0x40] sm:$0xff] %v1207_v36 }
 0x2e0   : > { %v2197_v37 = vpop.f32.mrf.mxu0  ;;  %v2205_v38 = vpop.f32.mrf.mxu1 }
 0x2e1   : > { %1257 = vst [vmem:[#allocation4 + $0x18] sm:$0xff] %v2197_v37  ;;  %1265 = vst [vmem:[#allocation4 + $0x38] sm:$0xff] %v2205_v38 }
 0x2e2   : > { %v1178_v39 = vpop.f32.mrf.mxu0  ;;  %v1210_v40 = vpop.f32.mrf.mxu1 }
 0x2e3   : > { %1255 = vst [vmem:[#allocation4] sm:$0xff] %v1178_v39  ;;  %1263 = vst [vmem:[#allocation4 + $0x20] sm:$0xff] %v1210_v40 }
 0x2e4   : > { %v2200_v41 = vpop.f32.mrf.mxu0  ;;  %v2208_v42 = vpop.f32.mrf.mxu1  ;;  %v1278_v54 = vld [vmem:[#allocation4 + $0x58] sm:$0xff] (%p335_p4)  ;;  %v1286_v5 = vld [vmem:[#allocation4 + $0x10] sm:$0xff] (%p335_p4) }
 0x2e5   : > { %1260 = vst [vmem:[#allocation4 + $0x8] sm:$0xff] %v2200_v41  ;;  %1268 = vst [vmem:[#allocation4 + $0x78] sm:$0xff] %v2208_v42  ;;  %v1301_v57 = vadd.f32 (%p335_p4), %v1822_v51, %v1278_v54  ;;  %v1309_v20 = vadd.f32 (%p335_p4), %v1822_v51, %v1286_v5 }
 0x2e6   : > { %v1191_v43 = vpop.f32.mrf.mxu0  ;;  %v1223_v44 = vpop.f32.mrf.mxu1  ;;  %v1276_v49 = vld [vmem:[#allocation4 + $0x30] sm:$0xff] (%p335_p4)  ;;  %v1284_v3 = vld [vmem:[#allocation4 + $0x40] sm:$0xff] (%p335_p4) }
 0x2e7   : > { %1258 = vst [vmem:[#allocation4 + $0x50] sm:$0xff] %v1191_v43  ;;  %1266 = vst [vmem:[#allocation4 + $0x60] sm:$0xff] %v1223_v44  ;;  %1275 = sbr.rel (!%p335_p4) target bundleno = 762 (0x2fa), region = 64  ;;  %v1299_v52 = vadd.f32 (%p335_p4), %v1822_v51, %v1276_v49  ;;  %v1317_v6 = vmax.f32 (%p335_p4), %v1301_v57, 0.0  ;;  %v1307_v15 = vadd.f32 (%p335_p4), %v1822_v51, %v1284_v3  ;;  %v1325_v29 = vmax.f32 (%p335_p4), %v1309_v20, 0.0 }
 0x2e8   : > { %v2201_v45 = vpop.f32.mrf.mxu0  ;;  %v2209_v46 = vpop.f32.mrf.mxu1  ;;  %v1279_v55 = vld [vmem:[#allocation4 + $0x18] sm:$0xff] (%p335_p4) }
 0x2e9   : > { %1261 = vst [vmem:[#allocation4 + $0x48] sm:$0xff] %v2201_v45  ;;  %1269 = vst [vmem:[#allocation4 + $0x28] sm:$0xff] %v2209_v46  ;;  %v1302_v58 = vadd.f32 (%p335_p4), %v1822_v51, %v1279_v55  ;;  %v1315_v63 = vmax.f32 (%p335_p4), %v1299_v52, 0.0  ;;  %v1287_v10 = vld [vmem:[#allocation4 + $0x38] sm:$0xff] (%p335_p4)  ;;  %v1323_v24 = vmax.f32 (%p335_p4), %v1307_v15, 0.0 }
 0x2ea   : > { %v1194_v47 = vpop.f32.mrf.mxu0  ;;  %v1226_v48 = vpop.f32.mrf.mxu1  ;;  %v1277_v50 = vld [vmem:[#allocation4] sm:$0xff] (%p335_p4)  ;;  %v1310_v25 = vadd.f32 (%p335_p4), %v1822_v51, %v1287_v10 }
 0x2eb   : > { %1259 = vst [vmem:[#allocation4 + $0x68] sm:$0xff] %v1194_v47  ;;  %1267 = vst [vmem:[#allocation4 + $0x70] sm:$0xff] %v1226_v48  ;;  %v1300_v53 = vadd.f32 (%p335_p4), %v1822_v51, %v1277_v50  ;;  %v1285_v4 = vld [vmem:[#allocation4 + $0x20] sm:$0xff] (%p335_p4)  ;;  %v1318_v7 = vmax.f32 (%p335_p4), %v1302_v58, 0.0 }
 0x2ec   : > { %v1282_v61 = vld [vmem:[#allocation4 + $0x8] sm:$0xff]  ;;  %v1308_v19 = vadd.f32 %v1822_v51, %v1285_v4  ;;  %v1290_v21 = vld [vmem:[#allocation4 + $0x78] sm:$0xff]  ;;  %v1326_v31 = vmax.f32 %v1310_v25, 0.0 }
 0x2ed   : > { %v1316_v0 = vmax.f32 %v1300_v53, 0.0  ;;  %v1305_v2 = vadd.f32 %v1822_v51, %v1282_v61  ;;  %v1995_v17 = vpack.c.bf16 %v1318_v7, %v1317_v6  ;;  %v1313_v33 = vadd.f32 %v1822_v51, %v1290_v21 }
 0x2ee   : > { %v1280_v56 = vld [vmem:[#allocation4 + $0x50] sm:$0xff]  ;;  %v1288_v11 = vld [vmem:[#allocation4 + $0x60] sm:$0xff]  ;;  %v1324_v28 = vmax.f32 %v1308_v19, 0.0  ;;  %v2015_v37 = vpack.c.bf16 %v1326_v31, %v1325_v29 }
 0x2ef   : > { %v1303_v60 = vadd.f32 %v1822_v51, %v1280_v56  ;;  %v1990_v12 = vpack.c.bf16 %v1316_v0, %v1315_v63  ;;  %v1321_v14 = vmax.f32 %v1305_v2, 0.0  ;;  %v1311_v26 = vadd.f32 %v1822_v51, %v1288_v11  ;;  %2041 = vst [vmem:[#allocation3 + $0x8] sm:$0xff] %v1995_v17  }
 0x2f0   : > { %v1283_v62 = vld [vmem:[#allocation4 + $0x48] sm:$0xff]  ;;  %v2010_v35 = vpack.c.bf16 %v1324_v28, %v1323_v24  ;;  %v1329_v38 = vmax.f32 %v1313_v33, 0.0  ;;  %2045 = vst [vmem:[#allocation3 + $0x28] sm:$0xff] %v2015_v37  }
 0x2f1   : > { %v1319_v8 = vmax.f32 %v1303_v60, 0.0  ;;  %v1306_v9 = vadd.f32 %v1822_v51, %v1283_v62  ;;  %v1291_v22 = vld [vmem:[#allocation4 + $0x28] sm:$0xff]  ;;  %1991 = vst [vmem:[#allocation3] sm:$0xff] %v1990_v12   ;;  %v1327_v32 = vmax.f32 %v1311_v26, 0.0 }
 0x2f2   : > { %v1281_v59 = vld [vmem:[#allocation4 + $0x68] sm:$0xff]  ;;  %v1289_v16 = vld [vmem:[#allocation4 + $0x70] sm:$0xff]  ;;  %v1314_v34 = vadd.f32 %v1822_v51, %v1291_v22  ;;  %2044 = vst [vmem:[#allocation3 + $0x20] sm:$0xff] %v2010_v35  }
 0x2f3   : > { %v1304_v1 = vadd.f32 %v1822_v51, %v1281_v59  ;;  %v1322_v18 = vmax.f32 %v1306_v9, 0.0  ;;  %v1312_v30 = vadd.f32 %v1822_v51, %v1289_v16 }
 0x2f4   : > { %v1330_v39 = vmax.f32 %v1314_v34, 0.0 }
 0x2f5   : > { %v1320_v13 = vmax.f32 %v1304_v1, 0.0  ;;  %v2005_v27 = vpack.c.bf16 %v1322_v18, %v1321_v14  ;;  %v1328_v36 = vmax.f32 %v1312_v30, 0.0 }
 0x2f6   : > { %v2025_v41 = vpack.c.bf16 %v1330_v39, %v1329_v38 }
 0x2f7   : > { %v2000_v23 = vpack.c.bf16 %v1320_v13, %v1319_v8  ;;  %2043 = vst [vmem:[#allocation3 + $0x18] sm:$0xff] %v2005_v27   ;;  %v2020_v40 = vpack.c.bf16 %v1328_v36, %v1327_v32 }
 0x2f8   : > { %2047 = vst [vmem:[#allocation3 + $0x38] sm:$0xff] %v2025_v41  }
 0x2f9   : > { %2042 = vst [vmem:[#allocation3 + $0x10] sm:$0xff] %v2000_v23   ;;  %2046 = vst [vmem:[#allocation3 + $0x30] sm:$0xff] %v2020_v40  }
 0x2fa PF: > { %1419 = sbr.rel (!%p1270_p7) target bundleno = 1003 (0x3eb), region = 68  ;;  %v1434_v42 = vld [vmem:[#allocation4 + $0x78] sm:$0xff] (%p1270_p7)  ;;  %v2560_v44 = vld [vmem:[%s2481_s9] ss:$0 sm:$0xff] (%p1270_p7)  ;;  %v2409_v45 = vmov (%p1270_p7), 0.0   ;;  %v1430_v50 = vld [vmem:[#allocation4 + $0x10] sm:$0xff] (%p1270_p7) }
 0x2fb   : > { %2210 = vmatprep.subr.bf16.mxu0 (%p1270_p7), %v2409_v45  ;;  %v1457_v46 = vadd.f32 (%p1270_p7), %v2560_v44, %v1434_v42  ;;  %vm2410_vm0 = vmmov (%p1270_p7), 0   ;;  %v1431_v53 = vld [vmem:[#allocation4 + $0x38] sm:$0xff] (%p1270_p7)  ;;  %v1453_v56 = vadd.f32 (%p1270_p7), %v2560_v44, %v1430_v50  ;;  %v1428_v58 = vld [vmem:[#allocation4 + $0x40] sm:$0xff] (%p1270_p7)  ;;  %v1426_v4 = vld [vmem:[#allocation4 + $0x8] sm:$0xff] (%p1270_p7) }
 0x2fc   : > { %v1432_v48 = vld [vmem:[#allocation4 + $0x60] sm:$0xff] (%p1270_p7)  ;;  %2226 = vmatprep.mubr.msk.bf16.mxu0 (%p1270_p7), %vm2410_vm0, %v2409_v45  ;;  %v1454_v57 = vadd.f32 (%p1270_p7), %v2560_v44, %v1431_v53  ;;  %v1451_v63 = vadd.f32 (%p1270_p7), %v2560_v44, %v1428_v58  ;;  %v1449_v9 = vadd.f32 (%p1270_p7), %v2560_v44, %v1426_v4  ;;  %v1424_v11 = vld [vmem:[#allocation4 + $0x50] sm:$0xff] (%p1270_p7)  ;;  %v1422_v18 = vld [vmem:[#allocation4 + $0x58] sm:$0xff] (%p1270_p7) }
 0x2fd   : > { %v1455_v51 = vadd.f32 (%p1270_p7), %v2560_v44, %v1432_v48  ;;  %v1473_v54 = vmax.f32 (%p1270_p7), %v1457_v46, 0.0  ;;  %v1429_v61 = vld [vmem:[#allocation4 + $0x20] sm:$0xff] (%p1270_p7)  ;;  %v1469_v1 = vmax.f32 (%p1270_p7), %v1453_v56, 0.0  ;;  %v1447_v13 = vadd.f32 (%p1270_p7), %v2560_v44, %v1424_v11  ;;  %v1423_v19 = vld [vmem:[#allocation4 + $0x18] sm:$0xff] (%p1270_p7)  ;;  %v1420_v25 = vld [vmem:[#allocation4 + $0x30] sm:$0xff] (%p1270_p7) }
 0x2fe   : > { %v1435_v43 = vld [vmem:[#allocation4 + $0x28] sm:$0xff] (%p1270_p7)  ;;  %v1470_v2 = vmax.f32 (%p1270_p7), %v1454_v57, 0.0  ;;  %v1452_v3 = vadd.f32 (%p1270_p7), %v2560_v44, %v1429_v61  ;;  %v1467_v6 = vmax.f32 (%p1270_p7), %v1451_v63, 0.0  ;;  %v1465_v15 = vmax.f32 (%p1270_p7), %v1449_v9, 0.0  ;;  %v1421_v26 = vld [vmem:[#allocation4] sm:$0xff] (%p1270_p7) }
 0x2ff   : > { %v1458_v47 = vadd.f32 %v2560_v44, %v1435_v43  ;;  %v1471_v59 = vmax.f32 %v1455_v51, 0.0  ;;  %v1427_v5 = vld [vmem:[#allocation4 + $0x48] sm:$0xff]  ;;  %v1445_v20 = vadd.f32 %v2560_v44, %v1422_v18  ;;  %v1463_v22 = vmax.f32 %v1447_v13, 0.0  ;;  %v1476_v36 = vld [vmem:[%s2635_s4] sm:$0xf] }
 0x300   : > { %v1433_v49 = vld [vmem:[#allocation4 + $0x70] sm:$0xff]  ;;  %v1482_v7 = vpack.c.bf16 %v1470_v2, %v1469_v1  ;;  %v1468_v8 = vmax.f32 %v1452_v3, 0.0  ;;  %v1450_v10 = vadd.f32 %v2560_v44, %v1427_v5  ;;  %v1425_v12 = vld [vmem:[#allocation4 + $0x68] sm:$0xff]  ;;  %v1446_v24 = vadd.f32 %v2560_v44, %v1423_v19  ;;  %v1475_v37 = vld [vmem:[#allocation5] sm:$0xff] }
 0x301   : > { %v1456_v52 = vadd.f32 %v2560_v44, %v1433_v49  ;;  %v1474_v55 = vmax.f32 %v1458_v47, 0.0  ;;  %v1448_v17 = vadd.f32 %v2560_v44, %v1425_v12  ;;  %v1461_v27 = vmax.f32 %v1445_v20, 0.0 }
 0x302   : > { %v1481_v14 = vpack.c.bf16 %v1468_v8, %v1467_v6  ;;  %v1466_v16 = vmax.f32 %v1450_v10, 0.0  ;;  %v1462_v29 = vmax.f32 %v1446_v24, 0.0  ;;  %v1443_v30 = vadd.f32 %v2560_v44, %v1420_v25 }
 0x303   : > { %v1472_v60 = vmax.f32 %v1456_v52, 0.0  ;;  %v1484_v62 = vpack.c.bf16 %v1474_v55, %v1473_v54  ;;  %v1464_v23 = vmax.f32 %v1448_v17, 0.0  ;;  %v1444_v31 = vadd.f32 %v2560_v44, %v1421_v26 }
 0x304   : > { %v1480_v21 = vpack.c.bf16 %v1466_v16, %v1465_v15  ;;  %v1478_v32 = vpack.c.bf16 %v1462_v29, %v1461_v27  ;;  %v1459_v33 = vmax.f32 %v1443_v30, 0.0 }
 0x305   : > { %2211 = vmatpush3.bf16.msra.mxu0 %v1484_v62  ;;  %v1483_v0 = vpack.c.bf16 %v1472_v60, %v1471_v59  ;;  %v1479_v28 = vpack.c.bf16 %v1464_v23, %v1463_v22  ;;  %v1460_v34 = vmax.f32 %v1444_v31, 0.0 }
 0x306   : > { %2212 = vmatprep.subr.bf16.mxu0 %v2409_v45 }
 0x307   : > { %v1477_v35 = vpack.c.bf16 %v1460_v34, %v1459_v33 }
 0x309   : > { %2213 = vmatpush3.bf16.msra.mxu0 %v1483_v0 }
 0x30a   : > { %2214 = vmatprep.subr.bf16.mxu0 %v2409_v45 }
 0x30d   : > { %2215 = vmatpush3.bf16.msra.mxu0 %v1482_v7 }
 0x30e   : > { %2216 = vmatprep.subr.bf16.mxu0 %v2409_v45 }
 0x311   : > { %2217 = vmatpush3.bf16.msra.mxu0 %v1481_v14 }
 0x312   : > { %2218 = vmatprep.subr.bf16.mxu0 %v2409_v45 }
 0x315   : > { %2219 = vmatpush3.bf16.msra.mxu0 %v1480_v21 }
 0x316   : > { %2220 = vmatprep.subr.bf16.mxu0 %v2409_v45 }
 0x319   : > { %2221 = vmatpush3.bf16.msra.mxu0 %v1479_v28 }
 0x31a   : > { %2222 = vmatprep.subr.bf16.mxu0 %v2409_v45 }
 0x31d   : > { %2223 = vmatpush3.bf16.msra.mxu0 %v1478_v32 }
 0x31e   : > { %2224 = vmatprep.subr.bf16.mxu0 %v2409_v45 }
 0x321   : > { %2225 = vmatpush3.bf16.msra.mxu0 %v1477_v35 }
 0x324   : > { %2227 = vmatmul.mubr.bf16.vlgmr.msra.gmra.mxu0 %v1476_v36 }
 0x3e4   : > { %v1519_v38 = vpop.f32.mrf.mxu0 }
 0x3e5   : > { %v1525_v39 = vadd.f32 %v1519_v38, %v1475_v37 }
 0x3e6   : > { %v2228_v40 = vpop.f32.mrf.mxu0 }
 0x3e7   : > { %1526 = vst [vmem:[#allocation5] sm:$0xff] %v1525_v39 }
 0x3e8   : > { %v1522_v41 = vpop.f32.mrf.mxu0 }
 0x3ea   : > { %v2229_v42 = vpop.f32.mrf.mxu0 }
 0x3eb PF: > { %1530 = sbr.rel (!%p1270_p7) target bundleno = 1235 (0x4d3), region = 72  ;;  %v2376_v43 = vld [vmem:[%s2636_s5 + $0x38] sm:$0xff] (%p1270_p7)   ;;  %v2411_v44 = vmov (%p1270_p7), 0.0   ;;  %v2377_v45 = vld [vmem:[%s2636_s5 + $0x30] sm:$0xff] (%p1270_p7)   ;;  %vm2412_vm1 = vmmov (%p1270_p7), 0   ;;  %v2378_v46 = vld [vmem:[%s2636_s5 + $0x28] sm:$0xff] (%p1270_p7)  }
 0x3ec   : > { %2230 = vmatprep.subr.bf16.mxu0 (%p1270_p7), %v2411_v44  ;;  %2246 = vmatprep.mubr.msk.bf16.mxu0 (%p1270_p7), %vm2412_vm1, %v2411_v44  ;;  %v2379_v47 = vld [vmem:[%s2636_s5 + $0x20] sm:$0xff] (%p1270_p7)   ;;  %v2380_v48 = vld [vmem:[%s2636_s5 + $0x18] sm:$0xff] (%p1270_p7)   ;;  %v2381_v49 = vld [vmem:[%s2636_s5 + $0x10] sm:$0xff] (%p1270_p7)  }
 0x3ed   : > { %2231 = vmatpush3.bf16.msra.mxu0 (%p1270_p7), %v2376_v43  ;;  %v2382_v50 = vld [vmem:[%s2636_s5 + $0x8] sm:$0xff] (%p1270_p7)   ;;  %v2383_v51 = vld [vmem:[%s2636_s5] sm:$0xff] (%p1270_p7)  }
 0x3ee   : > { %2232 = vmatprep.subr.bf16.mxu0 (%p1270_p7), %v2411_v44  ;;  %v1531_v52 = vld [vmem:[#allocation5] sm:$0xff] (%p1270_p7) }
 0x3ef   : > { %v1532_v53 = vpack.c.bf16 (%p1270_p7), %v1531_v52, %v1531_v52  ;;  %v1842_v54 = vld [vmem:[%s2637_s6] ss:$0 sm:$0xff] (%p1270_p7) }
 0x3f1   : > { %2233 = vmatpush3.bf16.msra.mxu0 %v2377_v45 }
 0x3f2   : > { %2234 = vmatprep.subr.bf16.mxu0 %v2411_v44 }
 0x3f5   : > { %2235 = vmatpush3.bf16.msra.mxu0 %v2378_v46 }
 0x3f6   : > { %2236 = vmatprep.subr.bf16.mxu0 %v2411_v44 }
 0x3f9   : > { %2237 = vmatpush3.bf16.msra.mxu0 %v2379_v47 }
 0x3fa   : > { %2238 = vmatprep.subr.bf16.mxu0 %v2411_v44 }
 0x3fd   : > { %2239 = vmatpush3.bf16.msra.mxu0 %v2380_v48 }
 0x3fe   : > { %2240 = vmatprep.subr.bf16.mxu0 %v2411_v44 }
 0x401   : > { %2241 = vmatpush3.bf16.msra.mxu0 %v2381_v49 }
 0x402   : > { %2242 = vmatprep.subr.bf16.mxu0 %v2411_v44 }
 0x405   : > { %2243 = vmatpush3.bf16.msra.mxu0 %v2382_v50 }
 0x406   : > { %2244 = vmatprep.subr.bf16.mxu0 %v2411_v44 }
 0x409   : > { %2245 = vmatpush3.bf16.msra.mxu0 %v2383_v51 }
 0x40c   : > { %2247 = vmatmul.mubr.bf16.vlgmr.msra.gmra.mxu0 %v1532_v53 }
 0x4cc   : > { %v1638_v55 = vpop.f32.mrf.mxu0 }
 0x4cd   : > { %v1639_v56 = vadd.f32 %v1842_v54, %v1638_v55 }
 0x4ce   : > { %v2248_v57 = vpop.f32.mrf.mxu0 }
 0x4cf   : > { %1644 = vst [vmem:[%s2638_s7] sm:$0xff] %v1639_v56 }
 0x4d0   : > { %v1641_v58 = vpop.f32.mrf.mxu0 }
 0x4d2   : > { %v2249_v59 = vpop.f32.mrf.mxu0 }
 0x4d3 PF: > { %s17_s26 = sadd.s32 1, %s2406_s26   ;;  %s2639_s24 = smov %s2402_s25 }
 0x4d4   : > { %p14_p8 = scmp.ge.s32.totalorder %s17_s26, 5   ;;  %s2640_s25 = smov %s2642_s27 }
 0x4d6   :  { %16 = sbr.rel (!%p14_p8) target bundleno = 2 (0x2), region = 109 }

</bundles_post_ra>
